<compile_context>
chip_gen: v5e
topology: v5e:2x2
jax: 0.10.0
libtpu: 0.0.40
codegen_flags: <defaults>
</compile_context>

<pallas_src>
import functools

import jax
import jax.numpy as jnp
from jax import lax
from jax.experimental import pallas as pl
from jax.experimental.pallas import tpu as pltpu

# --- module constants (from VideoGlobalModel.__init__) -----------------------
C_I3D = 2048        # i3D feature channels (fixed by nn.Conv3d(2048, 512, ...))
C_CONV = 512        # conv output channels
NUM_CLASSES = 10    # opt.num_classes (small synthetic choice)
NUM_FRAMES = 4      # opt.num_frames (small synthetic choice)

_LANE = 128
_MAX_TS = 2048      # S rows per feature tile (bounds VMEM independent of S)
_MAX_VB = 8         # max videos batched per grid step in the small-S regime


# --- Pallas kernel: streaming channel-mean -> folded conv+fc matmul ----------
def _video_head_kernel(feat_ref, w_ref, b_ref, out_ref, acc_ref, *,
                       tile_s, vb, needs_mask, last_rows, inv_total_s):
    # feat_ref: (vb, tile_s, C_I3D)  feature tile (channels-last, bf16)
    # w_ref   : (C_I3D, A_pad)       bf16 folded weight  W_conv^T @ W_fc^T
    # b_ref   : (1, A_pad)           f32  folded bias    b_conv @ W_fc^T + b_fc
    # out_ref : (vb, 1, A_pad)       f32 logits (lane-padded)
    # acc_ref : (vb, C_I3D)          f32 running channel-sum over S (scratch)
    s_idx = pl.program_id(1)
    n_s = pl.num_programs(1)

    @pl.when(s_idx == 0)
    def _init():
        acc_ref[...] = jnp.zeros_like(acc_ref)

    def _accumulate(get_rows):
        # Channel-sum of this tile on the MXU with f32 accumulation:
        #   ones(1, tile_s) @ x(tile_s, C) -> (1, C), per video (vb is a small
        #   trace-time constant, so this unrolls into plain 2-D matmuls).
        ones_row = jnp.ones((1, tile_s), dtype=feat_ref.dtype)
        for v in range(vb):
            sub = jnp.dot(ones_row, get_rows(v),
                          preferred_element_type=jnp.float32)      # (1, C)
            acc_ref[pl.ds(v, 1), :] = acc_ref[pl.ds(v, 1), :] + sub

    if needs_mask:
        # Only the LAST S tile can be partial: interior tiles take the unmasked
        # path, so the full-tile select is paid exactly once per video.
        is_last = s_idx == n_s - 1

        @pl.when(jnp.logical_not(is_last))
        def _acc_full():
            _accumulate(lambda v: feat_ref[v])

        @pl.when(is_last)
        def _acc_masked():
            row = lax.broadcasted_iota(jnp.int32, (tile_s, 1), 0)
            valid = row < last_rows

            def _masked(v):
                x = feat_ref[v]
                # True select on x: padded tail rows are uninitialized memory;
                # a multiplicative mask would propagate NaN/Inf.
                return jnp.where(valid, x, jnp.zeros_like(x))

            _accumulate(_masked)
    else:
        _accumulate(lambda v: feat_ref[v])

    @pl.when(s_idx == n_s - 1)
    def _finalize():
        # AdaptiveAvgPool3d((1,1,1)) first: exact, because the 1x1x1 conv (+bias),
        # inference-time dropout (identity) and fc are all linear and commute
        # with global averaging.
        pooled = acc_ref[...] * inv_total_s                          # (vb, C) f32
        logits = jnp.dot(pooled.astype(w_ref.dtype), w_ref[...],
                         preferred_element_type=jnp.float32) + b_ref[...]
        out_ref[...] = logits[:, None, :]                            # (vb, 1, A_pad)


def _pick_s_tile(s, max_ts):
    """Pick the S-tile size; prefer a large exact divisor so no mask is needed."""
    if s <= max_ts:
        return s, False
    ts = max_ts
    while ts >= max(8, max_ts // 2):        # only accept big divisors
        if s % ts == 0:
            return ts, False
        ts -= 8
    return max_ts, True                     # fall back to masked last tile


def video_global_head(features, w_conv, b_conv, w_fc, b_fc, *, max_ts=_MAX_TS):
    """features: [V, S, C_I3D] channels-last (bf16 preferred) -> logits [V, A] f32."""
    V, S, C = features.shape
    A = w_fc.shape[1]
    a_pad = pl.cdiv(A, _LANE) * _LANE

    # Fold conv(1x1x1) -> dropout(identity) -> fc into a single matmul.
    # (Weights are stored transposed: w_conv = W_conv^T, w_fc = W_fc^T.)
    w_conv32 = w_conv.astype(jnp.float32)
    w_fc32 = w_fc.astype(jnp.float32)
    w_comb = jnp.dot(w_conv32, w_fc32)                                    # (C, A)
    b_comb = jnp.dot(b_conv.reshape(1, -1).astype(jnp.float32), w_fc32) \
        + b_fc.reshape(1, A).astype(jnp.float32)                         # (1, A)
    # Lane-pad so the kernel's output store is lane-dense; fold weight kept bf16.
    w_comb_p = jnp.zeros((C, a_pad), jnp.float32).at[:, :A].set(w_comb)
    w_comb_p = w_comb_p.astype(jnp.bfloat16)
    b_comb_p = jnp.zeros((1, a_pad), jnp.float32).at[:, :A].set(b_comb)

    ts, needs_mask = _pick_s_tile(S, max_ts)
    n_s = pl.cdiv(S, ts)
    last_rows = S - (n_s - 1) * ts

    # Small-S regime: batch several videos per grid step to amortize the
    # per-step pipeline overhead.  Only when the whole S fits in one tile.
    vb = 1
    if n_s == 1:
        cap = min(V, _MAX_VB, max(1, max_ts // max(S, 1)))
        for cand in range(cap, 0, -1):
            if V % cand == 0:
                vb = cand
                break
    n_v = V // vb

    kernel = functools.partial(
        _video_head_kernel, tile_s=ts, vb=vb, needs_mask=needs_mask,
        last_rows=last_rows, inv_total_s=1.0 / float(S))

    feat_bytes = features.dtype.itemsize
    cost = pl.CostEstimate(
        flops=2 * V * S * C + 2 * V * C * a_pad,
        transcendentals=0,
        bytes_accessed=(V * S * C * feat_bytes + 2 * C * a_pad + 4 * a_pad
                        + 4 * V * a_pad),
    )

    out = pl.pallas_call(
        kernel,
        out_shape=jax.ShapeDtypeStruct((V, 1, a_pad), jnp.float32),
        grid_spec=pltpu.PrefetchScalarGridSpec(
            num_scalar_prefetch=0,
            grid=(n_v, n_s),
            in_specs=[
                pl.BlockSpec((vb, ts, C), lambda v, s: (v, s, 0)),
                pl.BlockSpec((C, a_pad), lambda v, s: (0, 0)),
                pl.BlockSpec((1, a_pad), lambda v, s: (0, 0)),
            ],
            out_specs=pl.BlockSpec((vb, 1, a_pad), lambda v, s: (v, 0, 0)),
            scratch_shapes=[pltpu.VMEM((vb, C), jnp.float32)],
        ),
        compiler_params=pltpu.CompilerParams(
            dimension_semantics=("parallel", "arbitrary"),
            vmem_limit_bytes=32 << 20,
        ),
        cost_estimate=cost,
    )(features, w_comb_p, b_comb_p)
    return out[:, 0, :A]


# --- i3D backbone stand-in (plain JAX glue) ----------------------------------
def i3d_stub(x, w_proj):
    # TODO(synk): the real I3D backbone (`Net`) is an external module with no
    # definition here; this deterministic stub produces features of the expected
    # size, emitted channels-last and bf16 directly so no extra transpose/cast
    # pass over the big feature tensor is needed before the kernel.
    V, C, T, H, W = x.shape
    Tp, Hp, Wp = T // 2, H // 8, W // 8
    x = x.reshape(V, C, Tp, T // Tp, Hp, H // Hp, Wp, W // Wp).mean(axis=(3, 5, 7))
    feat = jnp.einsum("vcthw,cd->vthwd", x, w_proj)           # (V, Tp, Hp, Wp, 2048)
    return jax.nn.relu(feat).astype(jnp.bfloat16)


def video_global_model_forward(global_img_input, params):
    # TODO(synk): training-mode Dropout(0.3) not implemented (inference forward only).
    feat = i3d_stub(global_img_input, params["w_i3d_proj"])   # channels-last bf16
    V = feat.shape[0]
    feats = feat.reshape(V, -1, feat.shape[-1])               # (V, S, 2048)
    return video_global_head(
        feats, params["w_conv"], params["b_conv"], params["w_fc"], params["b_fc"]
    )


if __name__ == "__main__":
    key = jax.random.PRNGKey(0)
    k_in, k_proj, k_wc, k_bc, k_wf, k_bf, k_ft = jax.random.split(key, 7)

    V, T, H, W = 2, NUM_FRAMES, 16, 16
    # Input matching the module's contract [V x 3 x T x H x W] at small spatial size.
    global_img_input = jax.random.normal(k_in, (V, 3, T, H, W), dtype=jnp.float32)

    # Deterministic synthetic parameters (shapes from __init__; no checkpoint load).
    params = {
        # i3D stub projection 3 -> 2048
        "w_i3d_proj": jax.random.normal(k_proj, (3, C_I3D), jnp.float32) * 0.05,
        # Conv3d(2048, 512, 1) weight [512, 2048, 1, 1, 1] -> stored transposed [2048, 512]
        "w_conv": jax.random.normal(k_wc, (C_I3D, C_CONV), jnp.float32) * 0.02,
        "b_conv": jax.random.normal(k_bc, (1, C_CONV), jnp.float32) * 0.02,
        # Linear(512, num_classes) weight [A, 512] -> stored transposed [512, A]
        "w_fc": jax.random.normal(k_wf, (C_CONV, NUM_CLASSES), jnp.float32) * 0.05,
        "b_fc": jax.random.normal(k_bf, (1, NUM_CLASSES), jnp.float32) * 0.05,
    }

    # ---- check 1: full forward (small S -> batched-video single-tile path) ----
    logits = jax.block_until_ready(video_global_model_forward(global_img_input, params))
    assert logits.shape == (V, NUM_CLASSES)

    # Pure-JAX reference in the original conv -> avgpool -> (dropout id) -> fc order,
    # f32 weights on the same bf16 features (fold/pool-first reorder is exact; the
    # remaining deltas are bf16 rounding of the folded weight and FP sum order).
    feats_ref = i3d_stub(global_img_input, params["w_i3d_proj"])
    feats_ref = feats_ref.reshape(V, -1, C_I3D).astype(jnp.float32)
    conv_ref = jnp.einsum("vsc,cd->vsd", feats_ref, params["w_conv"]) + params["b_conv"]
    pooled_ref = conv_ref.mean(axis=1)
    ref = pooled_ref @ params["w_fc"] + params["b_fc"]
    err = float(jnp.max(jnp.abs(logits - ref)))
    assert jnp.allclose(logits, ref, atol=5e-3, rtol=5e-3), f"max abs err {err}"

    # ---- check 2: tiled path with a masked (partial) last S tile --------------
    S2 = 260   # not divisible by the forced 64-row tile -> exercises the mask path
    feats2 = (jax.random.normal(k_ft, (1, S2, C_I3D), jnp.float32) * 0.05
              ).astype(jnp.bfloat16)
    logits2 = jax.block_until_ready(video_global_head(
        feats2, params["w_conv"], params["b_conv"], params["w_fc"], params["b_fc"],
        max_ts=64))
    conv2 = jnp.einsum("vsc,cd->vsd", feats2.astype(jnp.float32),
                       params["w_conv"]) + params["b_conv"]
    ref2 = conv2.mean(axis=1) @ params["w_fc"] + params["b_fc"]
    err2 = float(jnp.max(jnp.abs(logits2 - ref2)))
    assert jnp.allclose(logits2, ref2, atol=5e-3, rtol=5e-3), f"max abs err {err2}"

    print("KERNEL_OK")
</pallas_src>

<mosaic_0001>
module attributes {stable_mosaic.version = 11 : i64} {
  func.func @_video_head_kernel(%arg0: i32, %arg1: i32, %arg2: memref<2x8x2048xbf16, #tpu.memory_space<vmem>>, %arg3: memref<2048x128xbf16, #tpu.memory_space<vmem>>, %arg4: memref<1x128xf32, #tpu.memory_space<vmem>>, %arg5: memref<2x1x128xf32, #tpu.memory_space<vmem>>, %arg6: memref<2x2048xf32, #tpu.memory_space<vmem>>) attributes {dimension_semantics = [#tpu.dimension_semantics<parallel>, #tpu.dimension_semantics<arbitrary>], iteration_bounds = array<i64: 1, 1>, scalar_prefetch = 0 : i64, scratch_operands = 1 : i64, tpu.core_type = #tpu.core_type<tc>, window_params = [{transform_indices = @transform_0, window_bounds = array<i64: 2, 8, 2048>}, {pipeline_mode = #tpu.pipeline_mode<synchronous>, transform_indices = @transform_1, window_bounds = array<i64: 2048, 128>}, {pipeline_mode = #tpu.pipeline_mode<synchronous>, transform_indices = @transform_2, window_bounds = array<i64: 1, 128>}, {transform_indices = @transform_3, window_bounds = array<i64: 2, 1, 128>}]} {
    %c0_i32 = arith.constant 0 : i32
    %0 = arith.cmpi eq, %arg1, %c0_i32 : i32
    %1 = arith.extui %0 : i1 to i32
    %c0_i32_0 = arith.constant 0 : i32
    %2 = arith.cmpi ne, %1, %c0_i32_0 : i32
    scf.if %2 {
      %cst_17 = arith.constant 0.000000e+00 : f32
      %19 = vector.broadcast %cst_17 : f32 to vector<2x2048xf32>
      %c0_18 = arith.constant 0 : index
      %c0_19 = arith.constant 0 : index
      %20 = vector.load %arg6[%c0_18, %c0_19] : memref<2x2048xf32, #tpu.memory_space<vmem>>, vector<2x2048xf32>
      tpu.vector_store %arg6[%c0_18, %c0_19], %19 {strides = array<i32>} : memref<2x2048xf32, #tpu.memory_space<vmem>>, vector<2x2048xf32>,
    } else {
    }
    %cst = arith.constant 1.000000e+00 : bf16
    %3 = vector.broadcast %cst : bf16 to vector<1x8xbf16>
    %c0 = arith.constant 0 : index
    %c0_1 = arith.constant 0 : index
    %c0_2 = arith.constant 0 : index
    %4 = vector.load %arg2[%c0, %c0_1, %c0_2] : memref<2x8x2048xbf16, #tpu.memory_space<vmem>>, vector<1x8x2048xbf16>
    %5 = vector.shape_cast %4 : vector<1x8x2048xbf16> to vector<8x2048xbf16>
    %cst_3 = arith.constant dense<0.000000e+00> : vector<1x2048xf32>
    %6 = tpu.matmul %3, %5, %cst_3 {dimension_numbers = #tpu.dot_dimension_numbers<[1], [0], [0], [1], [0, 0, 1, 1], [], []>} : vector<1x8xbf16>, vector<8x2048xbf16>, vector<1x2048xf32> -> vector<1x2048xf32>
    %c0_4 = arith.constant 0 : index
    %c0_5 = arith.constant 0 : index
    %7 = vector.load %arg6[%c0_4, %c0_5] : memref<2x2048xf32, #tpu.memory_space<vmem>>, vector<1x2048xf32>
    %8 = arith.addf %7, %6 : vector<1x2048xf32>
    %c0_6 = arith.constant 0 : index
    %c0_7 = arith.constant 0 : index
    %9 = vector.load %arg6[%c0_6, %c0_7] : memref<2x2048xf32, #tpu.memory_space<vmem>>, vector<1x2048xf32>
    tpu.vector_store %arg6[%c0_6, %c0_7], %8 {strides = array<i32>} : memref<2x2048xf32, #tpu.memory_space<vmem>>, vector<1x2048xf32>,
    %c1 = arith.constant 1 : index
    %c0_8 = arith.constant 0 : index
    %c0_9 = arith.constant 0 : index
    %10 = vector.load %arg2[%c1, %c0_8, %c0_9] : memref<2x8x2048xbf16, #tpu.memory_space<vmem>>, vector<1x8x2048xbf16>
    %11 = vector.shape_cast %10 : vector<1x8x2048xbf16> to vector<8x2048xbf16>
    %cst_10 = arith.constant dense<0.000000e+00> : vector<1x2048xf32>
    %12 = tpu.matmul %3, %11, %cst_10 {dimension_numbers = #tpu.dot_dimension_numbers<[1], [0], [0], [1], [0, 0, 1, 1], [], []>} : vector<1x8xbf16>, vector<8x2048xbf16>, vector<1x2048xf32> -> vector<1x2048xf32>
    %c1_11 = arith.constant 1 : index
    %c0_12 = arith.constant 0 : index
    %13 = vector.load %arg6[%c1_11, %c0_12] : memref<2x2048xf32, #tpu.memory_space<vmem>>, vector<1x2048xf32>
    %14 = arith.addf %13, %12 : vector<1x2048xf32>
    %c1_13 = arith.constant 1 : index
    %c0_14 = arith.constant 0 : index
    %15 = vector.load %arg6[%c1_13, %c0_14] : memref<2x2048xf32, #tpu.memory_space<vmem>>, vector<1x2048xf32>
    tpu.vector_store %arg6[%c1_13, %c0_14], %14 {strides = array<i32>} : memref<2x2048xf32, #tpu.memory_space<vmem>>, vector<1x2048xf32>,
    %c0_i32_15 = arith.constant 0 : i32
    %16 = arith.cmpi eq, %arg1, %c0_i32_15 : i32
    %17 = arith.extui %16 : i1 to i32
    %c0_i32_16 = arith.constant 0 : i32
    %18 = arith.cmpi ne, %17, %c0_i32_16 : i32
    scf.if %18 {
      %c0_17 = arith.constant 0 : index
      %c0_18 = arith.constant 0 : index
      %19 = vector.load %arg6[%c0_17, %c0_18] : memref<2x2048xf32, #tpu.memory_space<vmem>>, vector<2x2048xf32>
      %cst_19 = arith.constant 1.250000e-01 : f32
      %20 = vector.broadcast %cst_19 : f32 to vector<2x2048xf32>
      %21 = arith.mulf %19, %20 : vector<2x2048xf32>
      %22 = arith.truncf %21 : vector<2x2048xf32> to vector<2x2048xbf16>
      %c0_20 = arith.constant 0 : index
      %c0_21 = arith.constant 0 : index
      %23 = vector.load %arg3[%c0_20, %c0_21] : memref<2048x128xbf16, #tpu.memory_space<vmem>>, vector<2048x128xbf16>
      %cst_22 = arith.constant dense<0.000000e+00> : vector<2x128xf32>
      %24 = tpu.matmul %22, %23, %cst_22 {dimension_numbers = #tpu.dot_dimension_numbers<[1], [0], [0], [1], [0, 0, 1, 1], [], []>} : vector<2x2048xbf16>, vector<2048x128xbf16>, vector<2x128xf32> -> vector<2x128xf32>
      %c0_23 = arith.constant 0 : index
      %c0_24 = arith.constant 0 : index
      %25 = vector.load %arg4[%c0_23, %c0_24] : memref<1x128xf32, #tpu.memory_space<vmem>>, vector<1x128xf32>
      %26 = vector.broadcast %25 : vector<1x128xf32> to vector<2x128xf32>
      %27 = arith.addf %24, %26 : vector<2x128xf32>
      %28 = vector.shape_cast %27 : vector<2x128xf32> to vector<2x1x128xf32>
      %c0_25 = arith.constant 0 : index
      %c0_26 = arith.constant 0 : index
      %c0_27 = arith.constant 0 : index
      %29 = vector.load %arg5[%c0_25, %c0_26, %c0_27] : memref<2x1x128xf32, #tpu.memory_space<vmem>>, vector<2x1x128xf32>
      tpu.vector_store %arg5[%c0_25, %c0_26, %c0_27], %28 {strides = array<i32>} : memref<2x1x128xf32, #tpu.memory_space<vmem>>, vector<2x1x128xf32>,
    } else {
    }
    return
  }
  func.func @transform_0(%arg0: i32, %arg1: i32) -> (i32, i32, i32) {
    %c0_i32 = arith.constant 0 : i32
    %c0_i32_0 = arith.constant 0 : i32
    return %arg0, %arg1, %c0_i32 : i32, i32, i32
  }
  func.func @transform_1(%arg0: i32, %arg1: i32) -> (i32, i32) {
    %c0_i32 = arith.constant 0 : i32
    %c0_i32_0 = arith.constant 0 : i32
    %c0_i32_1 = arith.constant 0 : i32
    return %c0_i32, %c0_i32_0 : i32, i32
  }
  func.func @transform_2(%arg0: i32, %arg1: i32) -> (i32, i32) {
    %c0_i32 = arith.constant 0 : i32
    %c0_i32_0 = arith.constant 0 : i32
    %c0_i32_1 = arith.constant 0 : i32
    return %c0_i32, %c0_i32_0 : i32, i32
  }
  func.func @transform_3(%arg0: i32, %arg1: i32) -> (i32, i32, i32) {
    %c0_i32 = arith.constant 0 : i32
    %c0_i32_0 = arith.constant 0 : i32
    %c0_i32_1 = arith.constant 0 : i32
    return %arg0, %c0_i32, %c0_i32_0 : i32, i32, i32
  }
}

</mosaic_0001>

<bundles_post_ra>
// kernel: tpu_custom_call.1
= control target key start
LH: loop header
LB: loop body
LE: loop exit
PB: predicated region body
PF: predicated region fallthrough
CT: control target
= control target key end

     0   :  { %8 = vsyncpa [#allocation4], 0  ;;  %s3052_s0 = inlined_call_operand.hbm [shape: bf16[2,8,2048], index: 0, kind: input, shape index: {}]   ;;  %s3053_s1 = inlined_call_operand.hbm [shape: bf16[2048,128], index: 1, kind: input, shape index: {}]   ;;  %s3054_s2 = inlined_call_operand.vmem [shape: f32[1,128], index: 2, kind: input, shape index: {}]   ;;  %s3055_s3 = inlined_call_operand.hbm [shape: f32[2,1,128], index: 3, kind: output, shape index: {}]  }
   0x1   :  { %9 = vsyncpa [#allocation7], 0 }
   0x2   :  { %10 = vsyncpa [#allocation5], 0  ;;  %s15_s14 = sshll.u32 %s3052_s0, 4  ;;  %s2874_s15 = smov [#allocation3]   ;;  %s16_s14 = int_to_ptr.hbm [resolvable:$true] %s15_s14 }
   0x3   :  { %s17_s16 = sshll.u32 %s2874_s15, 4  ;;  %s28_s19 = sshll.u32 %s3053_s1, 4  ;;  %s18_s16 = int_to_ptr.vmem [resolvable:$true] %s17_s16  ;;  %s29_s19 = int_to_ptr.hbm [resolvable:$true] %s28_s19 }
   0x4   :  { %s2875_s20 = smov 1024   ;;  %s2876_s21 = smov 64  }
   0x5   :  { %23 = dma.hbm_to_vmem [thread:$0]  %s16_s14, 2048, %s18_s16, [#allocation4], %s2875_s20, %s2875_s20, %s2876_s21  }
   0x6   :  { %s2877_s22 = smov [#allocation6]   ;;  %s2878_s24 = smov 4  }
   0x7   :  { %s30_s23 = sshll.u32 %s2877_s22, 4  ;;  %s31_s23 = int_to_ptr.vmem [resolvable:$true] %s30_s23 }
   0x8   :  { %36 = dma.hbm_to_vmem [thread:$0]  %s29_s19, 16384, %s31_s23, [#allocation7], %s2876_s21, %s2876_s21, %s2878_s24  }
   0x9   :  { %2868 = dma.done.wait [#allocation4], 2048  }
   0xa   :  { %2869 = vsyncadd [#allocation4], 4294965248 }
   0xb   :  { %2870 = dma.done.wait [#allocation7], 16384  }
   0xc   :  { %2871 = vsyncadd [#allocation7], 4294950912  ;;  %v57_v0 = vld [vmem:[#allocation3] sm:$0xff]  ;;  %vm109_vm0 = vcmask 1043456   ;;  %v58_v1 = vld [vmem:[#allocation3 + $0x8] sm:$0xff]  ;;  %vm105_vm1 = vcmask 64512  }
   0xd   :  { %v60_v2 = vld [vmem:[#allocation3 + $0x18] sm:$0xff]  ;;  %v73_v3 = vunpack.c.l.b16 %v57_v0  ;;  %v74_v4 = vunpack.c.h.b16 %v57_v0  ;;  %v75_v5 = vunpack.c.l.b16 %v58_v1  ;;  %v76_v6 = vunpack.c.h.b16 %v58_v1  ;;  %v59_v7 = vld [vmem:[#allocation3 + $0x10] sm:$0xff]  ;;  %v62_v20 = vld [vmem:[#allocation3 + $0x28] sm:$0xff]  ;;  %s2099_s28 = sshll.u32 %s3055_s3, 4  ;;  %s2882_s29 = smov 16   ;;  %s2100_s28 = int_to_ptr.hbm [resolvable:$true] %s2099_s28 }
   0xe   :  { %v79_v8 = vunpack.c.l.b16 %v60_v2  ;;  %v80_v9 = vunpack.c.h.b16 %v60_v2  ;;  %v77_v10 = vunpack.c.l.b16 %v59_v7  ;;  %v78_v11 = vunpack.c.h.b16 %v59_v7  ;;  %v61_v21 = vld [vmem:[#allocation3 + $0x20] sm:$0xff]  ;;  %v64_v43 = vld [vmem:[#allocation3 + $0x38] sm:$0xff]  ;;  %v63_v44 = vld [vmem:[#allocation3 + $0x30] sm:$0xff]  ;;  %s2883_s30 = smov 1  }
   0xf   :  { %v89_v12 = vpack.c.b16 %v73_v3, %v73_v3  ;;  %v90_v13 = vpack.c.b16 %v74_v4, %v74_v4  ;;  %v91_v14 = vpack.c.b16 %v75_v5, %v75_v5  ;;  %v92_v15 = vpack.c.b16 %v76_v6, %v76_v6  ;;  %v427_v57 = vld [vmem:[#allocation3 + $0x48] sm:$0xff]  ;;  %v426_v58 = vld [vmem:[#allocation3 + $0x40] sm:$0xff]  ;;  %v429_v7 = vld [vmem:[#allocation3 + $0x58] sm:$0xff] }
  0x10   :  { %v95_v16 = vpack.c.b16 %v79_v8, %v79_v8  ;;  %v96_v17 = vpack.c.b16 %v80_v9, %v80_v9  ;;  %v93_v18 = vpack.c.b16 %v77_v10, %v77_v10  ;;  %v94_v19 = vpack.c.b16 %v78_v11, %v78_v11  ;;  %v428_v8 = vld [vmem:[#allocation3 + $0x50] sm:$0xff] }
  0x11   :  { %v111_v22 = vsel %vm109_vm0, %v89_v12, 0  ;;  %v114_v23 = vsel %vm109_vm0, %v90_v13, 0  ;;  %v117_v24 = vsel %vm109_vm0, %v91_v14, 0  ;;  %v120_v25 = vsel %vm109_vm0, %v92_v15, 0 }
  0x12   :  { %165 = vmatpush.bf16.msra.mxu0 %v111_v22  ;;  %178 = vmatpush.bf16.msra.mxu1 %v114_v23  ;;  %v129_v26 = vsel %vm109_vm0, %v95_v16, 0  ;;  %v132_v27 = vsel %vm109_vm0, %v96_v17, 0  ;;  %v83_v28 = vunpack.c.l.b16 %v62_v20  ;;  %v84_v29 = vunpack.c.h.b16 %v62_v20 }
  0x13   :  { %191 = vmatpush.bf16.msra.mxu2 %v117_v24  ;;  %204 = vmatpush.bf16.msra.mxu3 %v120_v25  ;;  %v81_v30 = vunpack.c.l.b16 %v61_v21  ;;  %v82_v31 = vunpack.c.h.b16 %v61_v21  ;;  %v123_v32 = vsel %vm109_vm0, %v93_v18, 0  ;;  %v126_v33 = vsel %vm109_vm0, %v94_v19, 0  ;;  %v431_v21 = vld [vmem:[#allocation3 + $0x68] sm:$0xff] }
  0x14   :  { %v2879_v34 = vmov 1065369472   ;;  %v99_v35 = vpack.c.b16 %v83_v28, %v83_v28  ;;  %v100_v36 = vpack.c.b16 %v84_v29, %v84_v29  ;;  %v87_v45 = vunpack.c.l.b16 %v64_v43 }
  0x15   :  { %2113 = vmatmul.msk.bf16.vlgmr.msra.gmra.mxu0 %vm105_vm1, %v2879_v34  ;;  %2114 = vmatmul.msk.bf16.vlgmr.msra.gmra.mxu1 %vm105_vm1, %v2879_v34  ;;  %v97_v37 = vpack.c.b16 %v81_v30, %v81_v30  ;;  %v98_v38 = vpack.c.b16 %v82_v31, %v82_v31  ;;  %v88_v46 = vunpack.c.h.b16 %v64_v43  ;;  %v85_v47 = vunpack.c.l.b16 %v63_v44 }
  0x16   :  { %2115 = vmatmul.msk.bf16.vlgmr.msra.gmra.mxu2 %vm105_vm1, %v2879_v34  ;;  %2116 = vmatmul.msk.bf16.vlgmr.msra.gmra.mxu3 %vm105_vm1, %v2879_v34  ;;  %v141_v39 = vsel %vm109_vm0, %v99_v35, 0  ;;  %v144_v40 = vsel %vm109_vm0, %v100_v36, 0  ;;  %v86_v48 = vunpack.c.h.b16 %v63_v44  ;;  %v103_v49 = vpack.c.b16 %v87_v45, %v87_v45  ;;  %v433_v36 = vld [vmem:[#allocation3 + $0x78] sm:$0xff] }
  0x17   :  { %243 = vmatpush.bf16.msrb.mxu2 %v129_v26  ;;  %256 = vmatpush.bf16.msrb.mxu3 %v132_v27  ;;  %v135_v41 = vsel %vm109_vm0, %v97_v37, 0  ;;  %v138_v42 = vsel %vm109_vm0, %v98_v38, 0  ;;  %v104_v50 = vpack.c.b16 %v88_v46, %v88_v46  ;;  %v101_v51 = vpack.c.b16 %v85_v47, %v85_v47  ;;  %v430_v26 = vld [vmem:[#allocation3 + $0x60] sm:$0xff] }
  0x18   :  { %217 = vmatpush.bf16.msrb.mxu0 %v123_v32  ;;  %230 = vmatpush.bf16.msrb.mxu1 %v126_v33  ;;  %v102_v52 = vpack.c.b16 %v86_v48, %v86_v48  ;;  %v153_v53 = vsel %vm109_vm0, %v103_v49, 0  ;;  %v444_v59 = vunpack.c.l.b16 %v427_v57  ;;  %v445_v60 = vunpack.c.h.b16 %v427_v57 }
  0x19   :  { %v156_v54 = vsel %vm109_vm0, %v104_v50, 0  ;;  %v147_v55 = vsel %vm109_vm0, %v101_v51, 0  ;;  %v442_v61 = vunpack.c.l.b16 %v426_v58  ;;  %v443_v62 = vunpack.c.h.b16 %v426_v58 }
  0x1a   :  { %v150_v56 = vsel %vm109_vm0, %v102_v52, 0  ;;  %v460_v63 = vpack.c.b16 %v444_v59, %v444_v59  ;;  %v461_v0 = vpack.c.b16 %v445_v60, %v445_v60  ;;  %v448_v9 = vunpack.c.l.b16 %v429_v7 }
  0x1b   :  { %295 = vmatpush.bf16.msra.mxu2 %v141_v39  ;;  %308 = vmatpush.bf16.msra.mxu3 %v144_v40  ;;  %v458_v1 = vpack.c.b16 %v442_v61, %v442_v61  ;;  %v459_v2 = vpack.c.b16 %v443_v62, %v443_v62  ;;  %v449_v10 = vunpack.c.h.b16 %v429_v7  ;;  %v446_v11 = vunpack.c.l.b16 %v428_v8 }
  0x1c   :  { %269 = vmatpush.bf16.msra.mxu0 %v135_v41  ;;  %282 = vmatpush.bf16.msra.mxu1 %v138_v42  ;;  %v481_v3 = vsel %vm109_vm0, %v460_v63, 0  ;;  %v484_v4 = vsel %vm109_vm0, %v461_v0, 0  ;;  %v447_v12 = vunpack.c.h.b16 %v428_v8  ;;  %v464_v13 = vpack.c.b16 %v448_v9, %v448_v9  ;;  %v432_v41 = vld [vmem:[#allocation3 + $0x70] sm:$0xff] }
  0x1d   :  { %v475_v5 = vsel %vm109_vm0, %v458_v1, 0  ;;  %v478_v6 = vsel %vm109_vm0, %v459_v2, 0  ;;  %v465_v14 = vpack.c.b16 %v449_v10, %v449_v10  ;;  %v462_v15 = vpack.c.b16 %v446_v11, %v446_v11 }
  0x1e   :  { %v463_v16 = vpack.c.b16 %v447_v12, %v447_v12  ;;  %v493_v17 = vsel %vm109_vm0, %v464_v13, 0  ;;  %v452_v22 = vunpack.c.l.b16 %v431_v21  ;;  %v453_v23 = vunpack.c.h.b16 %v431_v21  ;;  %v2688_v12 = vld [vmem:[#allocation6 + $0xf8] sm:$0xff] }
  0x1f   :  { %v496_v18 = vsel %vm109_vm0, %v465_v14, 0  ;;  %v487_v19 = vsel %vm109_vm0, %v462_v15, 0  ;;  %v450_v29 = vunpack.c.l.b16 %v430_v26  ;;  %v451_v30 = vunpack.c.h.b16 %v430_v26  ;;  %v2662_v26 = vld [vmem:[#allocation6 + $0x28] sm:$0xff] }
  0x20   :  { %v490_v20 = vsel %vm109_vm0, %v463_v16, 0  ;;  %v468_v24 = vpack.c.b16 %v452_v22, %v452_v22  ;;  %v469_v25 = vpack.c.b16 %v453_v23, %v453_v23  ;;  %v456_v37 = vunpack.c.l.b16 %v433_v36  ;;  %v2687_v22 = vld [vmem:[#allocation6 + $0xf0] sm:$0xff] }
  0x21   :  { %v466_v31 = vpack.c.b16 %v450_v29, %v450_v29  ;;  %v467_v32 = vpack.c.b16 %v451_v30, %v451_v30  ;;  %v457_v38 = vunpack.c.h.b16 %v433_v36  ;;  %v454_v44 = vunpack.c.l.b16 %v432_v41  ;;  %v2685_v36 = vld [vmem:[#allocation6 + $0xe0] sm:$0xff] }
  0x22   :  { %v505_v27 = vsel %vm109_vm0, %v468_v24, 0  ;;  %v508_v28 = vsel %vm109_vm0, %v469_v25, 0  ;;  %v472_v39 = vpack.c.b16 %v456_v37, %v456_v37  ;;  %v455_v45 = vunpack.c.h.b16 %v432_v41  ;;  %v2676_v41 = vld [vmem:[#allocation6 + $0x98] sm:$0xff] }
  0x23   :  { %v499_v33 = vsel %vm109_vm0, %v466_v31, 0  ;;  %v502_v35 = vsel %vm109_vm0, %v467_v32, 0  ;;  %v473_v40 = vpack.c.b16 %v457_v38, %v457_v38  ;;  %v470_v46 = vpack.c.b16 %v454_v44, %v454_v44  ;;  %v2686_v31 = vld [vmem:[#allocation6 + $0xe8] sm:$0xff]  ;;  %v2661_v32 = vld [vmem:[#allocation6 + $0x20] sm:$0xff]  ;;  %v2684_v44 = vld [vmem:[#allocation6 + $0xd8] sm:$0xff] }
  0x24   :  { %v517_v42 = vsel %vm109_vm0, %v472_v39, 0  ;;  %v471_v47 = vpack.c.b16 %v455_v45, %v455_v45  ;;  %v2880_v50 = vmov 0.0   ;;  %vm401_vm2 = vcmask 1042434   ;;  %v2660_v39 = vld [vmem:[#allocation6 + $0x18] sm:$0xff]  ;;  %v2659_v45 = vld [vmem:[#allocation6 + $0x10] sm:$0xff] }
  0x25   :  { %2117 = vmatmul.msk.bf16.vlgmr.msrb.gmra.mxu0 %vm105_vm1, %v2879_v34  ;;  %2118 = vmatmul.msk.bf16.vlgmr.msrb.gmra.mxu1 %vm105_vm1, %v2879_v34  ;;  %v520_v43 = vsel %vm109_vm0, %v473_v40, 0  ;;  %v511_v48 = vsel %vm109_vm0, %v470_v46, 0  ;;  %53 = vst [vmem:[#allocation2] sm:$0xff] %v2880_v50  ;;  %vm405_vm3 = vcmask 1044484   ;;  %vm399_vm4 = vcmask 1040384   ;;  %v2668_v40 = vld [vmem:[#allocation6 + $0x58] sm:$0xff] }
  0x26   :  { %2119 = vmatmul.msk.bf16.vlgmr.msrb.gmra.mxu2 %vm105_vm1, %v2879_v34  ;;  %2120 = vmatmul.msk.bf16.vlgmr.msrb.gmra.mxu3 %vm105_vm1, %v2879_v34  ;;  %v514_v49 = vsel %vm109_vm0, %v471_v47, 0  ;;  %54 = vst [vmem:[#allocation2 + $0x8] sm:$0xff] %v2880_v50  ;;  %vm403_vm5 = vcmask 1041408   ;;  %vm407_vm6 = vcmask 1046534   ;;  %vm409_vm7 = vcmask 1045508   ;;  %v2667_v46 = vld [vmem:[#allocation6 + $0x50] sm:$0xff] }
  0x27   :  { %347 = vmatpush.bf16.msrb.mxu2 %v153_v53  ;;  %360 = vmatpush.bf16.msrb.mxu3 %v156_v54  ;;  %55 = vst [vmem:[#allocation2 + $0x10] sm:$0xff] %v2880_v50  ;;  %v2675_v47 = vld [vmem:[#allocation6 + $0x90] sm:$0xff] }
  0x28   :  { %321 = vmatpush.bf16.msrb.mxu0 %v147_v55  ;;  %334 = vmatpush.bf16.msrb.mxu1 %v150_v56  ;;  %56 = vst [vmem:[#allocation2 + $0x18] sm:$0xff] %v2880_v50 }
  0x2d   :  { %v366_v14 = vld [vmem:[#allocation2] ss:$2 sm:$0xff] }
  0x35   :  { %2121 = vmatmul.msk.bf16.vlgmr.msra.gmra.mxu0 %vm105_vm1, %v2879_v34  ;;  %2122 = vmatmul.msk.bf16.vlgmr.msra.gmra.mxu1 %vm105_vm1, %v2879_v34 }
  0x36   :  { %2123 = vmatmul.msk.bf16.vlgmr.msra.gmra.mxu2 %vm105_vm1, %v2879_v34  ;;  %2124 = vmatmul.msk.bf16.vlgmr.msra.gmra.mxu3 %vm105_vm1, %v2879_v34 }
  0x37   :  { %555 = vmatpush.bf16.msra.mxu2 %v481_v3  ;;  %568 = vmatpush.bf16.msra.mxu3 %v484_v4  ;;  %v2664_v3 = vld [vmem:[#allocation6 + $0x38] sm:$0xff] }
  0x38   :  { %529 = vmatpush.bf16.msra.mxu0 %v475_v5  ;;  %542 = vmatpush.bf16.msra.mxu1 %v478_v6  ;;  %v2672_v4 = vld [vmem:[#allocation6 + $0x78] sm:$0xff] }
  0x39   :  { %v2680_v5 = vld [vmem:[#allocation6 + $0xb8] sm:$0xff] }
  0x45   :  { %2125 = vmatmul.msk.bf16.vlgmr.msrb.gmra.mxu0 %vm105_vm1, %v2879_v34  ;;  %2126 = vmatmul.msk.bf16.vlgmr.msrb.gmra.mxu1 %vm105_vm1, %v2879_v34 }
  0x46   :  { %2127 = vmatmul.msk.bf16.vlgmr.msrb.gmra.mxu2 %vm105_vm1, %v2879_v34  ;;  %2128 = vmatmul.msk.bf16.vlgmr.msrb.gmra.mxu3 %vm105_vm1, %v2879_v34 }
  0x47   :  { %607 = vmatpush.bf16.msrb.mxu2 %v493_v17  ;;  %620 = vmatpush.bf16.msrb.mxu3 %v496_v18  ;;  %v2663_v18 = vld [vmem:[#allocation6 + $0x30] sm:$0xff] }
  0x48   :  { %581 = vmatpush.bf16.msrb.mxu0 %v487_v19  ;;  %594 = vmatpush.bf16.msrb.mxu1 %v490_v20  ;;  %v2671_v19 = vld [vmem:[#allocation6 + $0x70] sm:$0xff] }
  0x49   :  { %v2679_v20 = vld [vmem:[#allocation6 + $0xb0] sm:$0xff] }
  0x55   :  { %2129 = vmatmul.msk.bf16.vlgmr.msra.gmra.mxu0 %vm105_vm1, %v2879_v34  ;;  %2130 = vmatmul.msk.bf16.vlgmr.msra.gmra.mxu1 %vm105_vm1, %v2879_v34 }
  0x56   :  { %2131 = vmatmul.msk.bf16.vlgmr.msra.gmra.mxu2 %vm105_vm1, %v2879_v34  ;;  %2132 = vmatmul.msk.bf16.vlgmr.msra.gmra.mxu3 %vm105_vm1, %v2879_v34 }
  0x57   :  { %659 = vmatpush.bf16.msra.mxu2 %v505_v27  ;;  %672 = vmatpush.bf16.msra.mxu3 %v508_v28  ;;  %v2670_v27 = vld [vmem:[#allocation6 + $0x68] sm:$0xff] }
  0x58   :  { %633 = vmatpush.bf16.msra.mxu0 %v499_v33  ;;  %646 = vmatpush.bf16.msra.mxu1 %v502_v35  ;;  %v2678_v28 = vld [vmem:[#allocation6 + $0xa8] sm:$0xff]  ;;  %v2669_v33 = vld [vmem:[#allocation6 + $0x60] sm:$0xff] }
  0x59   :  { %v2677_v35 = vld [vmem:[#allocation6 + $0xa0] sm:$0xff] }
  0x65   :  { %2133 = vmatmul.msk.bf16.vlgmr.msrb.gmra.mxu0 %vm105_vm1, %v2879_v34  ;;  %2134 = vmatmul.msk.bf16.vlgmr.msrb.gmra.mxu1 %vm105_vm1, %v2879_v34 }
  0x66   :  { %2135 = vmatmul.msk.bf16.vlgmr.msrb.gmra.mxu2 %vm105_vm1, %v2879_v34  ;;  %2136 = vmatmul.msk.bf16.vlgmr.msrb.gmra.mxu3 %vm105_vm1, %v2879_v34 }
  0x67   :  { %711 = vmatpush.bf16.msrb.mxu2 %v517_v42  ;;  %724 = vmatpush.bf16.msrb.mxu3 %v520_v43 }
  0x68   :  { %685 = vmatpush.bf16.msrb.mxu0 %v511_v48  ;;  %698 = vmatpush.bf16.msrb.mxu1 %v514_v49  ;;  %v2683_v48 = vld [vmem:[#allocation6 + $0xd0] sm:$0xff] }
  0x75   :  { %2137 = vmatmul.msk.bf16.vlgmr.msra.gmra.mxu0 %vm105_vm1, %v2879_v34  ;;  %2138 = vmatmul.msk.bf16.vlgmr.msra.gmra.mxu1 %vm105_vm1, %v2879_v34 }
  0x76   :  { %2139 = vmatmul.msk.bf16.vlgmr.msra.gmra.mxu2 %vm105_vm1, %v2879_v34  ;;  %2140 = vmatmul.msk.bf16.vlgmr.msra.gmra.mxu3 %vm105_vm1, %v2879_v34 }
  0x77   :  { %1880 = vmatpush.bf16.msra.mxu0 %v2664_v3  ;;  %1893 = vmatpush.bf16.msra.mxu1 %v2672_v4  ;;  %v2720_v3 = vld [vmem:[#allocation6 + $0x1f8] sm:$0xff] }
  0x78   :  { %1906 = vmatpush.bf16.msra.mxu2 %v2680_v5  ;;  %1919 = vmatpush.bf16.msra.mxu3 %v2688_v12 }
  0x7b   :  { %1881 = vmatpush.bf16.msra.mxu0 %v2663_v18  ;;  %1894 = vmatpush.bf16.msra.mxu1 %v2671_v19  ;;  %v368_v18 = vld [vmem:[#allocation2 + $0x10] ss:$2 sm:$0xff] }
  0x7c   :  { %1907 = vmatpush.bf16.msra.mxu2 %v2679_v20  ;;  %1920 = vmatpush.bf16.msra.mxu3 %v2687_v22 }
  0x7f   :  { %1882 = vmatpush.bf16.msra.mxu0 %v2662_v26  ;;  %1895 = vmatpush.bf16.msra.mxu1 %v2670_v27  ;;  %v2718_v27 = vld [vmem:[#allocation6 + $0x1e8] sm:$0xff] }
  0x80   :  { %1908 = vmatpush.bf16.msra.mxu2 %v2678_v28  ;;  %1921 = vmatpush.bf16.msra.mxu3 %v2686_v31  ;;  %v2701_v31 = vld [vmem:[#allocation6 + $0x160] sm:$0xff] }
  0x83   :  { %1883 = vmatpush.bf16.msra.mxu0 %v2661_v32  ;;  %1896 = vmatpush.bf16.msra.mxu1 %v2669_v33 }
  0x84   :  { %1909 = vmatpush.bf16.msra.mxu2 %v2677_v35  ;;  %1922 = vmatpush.bf16.msra.mxu3 %v2685_v36  ;;  %v2709_v35 = vld [vmem:[#allocation6 + $0x1a0] sm:$0xff] }
  0x85   :  { %2141 = vmatmul.msk.bf16.vlgmr.msrb.gmra.mxu0 %vm105_vm1, %v2879_v34  ;;  %2142 = vmatmul.msk.bf16.vlgmr.msrb.gmra.mxu1 %vm105_vm1, %v2879_v34  ;;  %v2717_v36 = vld [vmem:[#allocation6 + $0x1e0] sm:$0xff] }
  0x86   :  { %2143 = vmatmul.msk.bf16.vlgmr.msrb.gmra.mxu2 %vm105_vm1, %v2879_v34  ;;  %2144 = vmatmul.msk.bf16.vlgmr.msrb.gmra.mxu3 %vm105_vm1, %v2879_v34 }
  0x87   :  { %1884 = vmatpush.bf16.msra.mxu0 %v2660_v39  ;;  %1897 = vmatpush.bf16.msra.mxu1 %v2668_v40  ;;  %v2708_v39 = vld [vmem:[#allocation6 + $0x198] sm:$0xff] }
  0x88   :  { %1910 = vmatpush.bf16.msra.mxu2 %v2676_v41  ;;  %1923 = vmatpush.bf16.msra.mxu3 %v2684_v44  ;;  %v2716_v40 = vld [vmem:[#allocation6 + $0x1d8] sm:$0xff] }
  0x8b   :  { %1885 = vmatpush.bf16.msra.mxu0 %v2659_v45  ;;  %1898 = vmatpush.bf16.msra.mxu1 %v2667_v46  ;;  %v2691_v45 = vld [vmem:[#allocation6 + $0x110] sm:$0xff] }
  0x8c   :  { %1911 = vmatpush.bf16.msra.mxu2 %v2675_v47  ;;  %1924 = vmatpush.bf16.msra.mxu3 %v2683_v48  ;;  %v2699_v46 = vld [vmem:[#allocation6 + $0x150] sm:$0xff] }
  0x8d   :  { %v2707_v47 = vld [vmem:[#allocation6 + $0x190] sm:$0xff] }
  0x8e   :  { %v2715_v48 = vld [vmem:[#allocation6 + $0x1d0] sm:$0xff] }
  0x92   :  { %v167_v51 = vpop.f32.mrf.mxu0  ;;  %v180_v52 = vpop.f32.mrf.mxu1 }
  0x93   :  { %v385_v34 = vrot.slane %v180_v52, 7  ;;  %v2666_v52 = vld [vmem:[#allocation6 + $0x48] sm:$0xff] }
  0x94   :  { %1899 = vmatpush.bf16.msra.mxu1 %v2666_v52  ;;  %v2714_v52 = vld [vmem:[#allocation6 + $0x1c8] sm:$0xff] }
  0x95   :  { %v400_v13 = vsel %vm399_vm4, %v167_v51, %v385_v34  ;;  %v2658_v51 = vld [vmem:[#allocation6 + $0x8] sm:$0xff]  ;;  %v2696_v34 = vld [vmem:[#allocation6 + $0x138] sm:$0xff] }
  0x96   :  { %1886 = vmatpush.bf16.msra.mxu0 %v2658_v51  ;;  %v2706_v51 = vld [vmem:[#allocation6 + $0x188] sm:$0xff] }
  0x99   :  { %v193_v53 = vpop.f32.mrf.mxu2  ;;  %v206_v54 = vpop.f32.mrf.mxu3 }
  0x9a   :  { %v169_v55 = vpop.f32.mrf.mxu0  ;;  %v182_v56 = vpop.f32.mrf.mxu1  ;;  %v386_v61 = vrot.slane %v193_v53, 6  ;;  %v387_v62 = vrot.slane %v206_v54, 5  ;;  %v2674_v53 = vld [vmem:[#allocation6 + $0x88] sm:$0xff] }
  0x9b   :  { %v2682_v56 = vld [vmem:[#allocation6 + $0xc8] sm:$0xff]  ;;  %1912 = vmatpush.bf16.msra.mxu2 %v2674_v53 }
  0x9c   :  { %v402_v6 = vsel %vm401_vm2, %v386_v61, %v387_v62  ;;  %1925 = vmatpush.bf16.msra.mxu3 %v2682_v56  ;;  %v2697_v56 = vld [vmem:[#allocation6 + $0x140] sm:$0xff] }
  0x9d   :  { %v404_v16 = vsel %vm403_vm5, %v400_v13, %v402_v6  ;;  %v2695_v13 = vld [vmem:[#allocation6 + $0x130] sm:$0xff] }
  0xa1   :  { %v195_v57 = vpop.f32.mrf.mxu2  ;;  %v208_v58 = vpop.f32.mrf.mxu3 }
  0xa2   :  { %v219_v59 = vpop.f32.mrf.mxu0  ;;  %v232_v60 = vpop.f32.mrf.mxu1  ;;  %v2657_v58 = vld [vmem:[#allocation6] sm:$0xff] }
  0xa3   :  { %v388_v63 = vrot.slane %v219_v59, 4  ;;  %v389_v0 = vrot.slane %v232_v60, 3  ;;  %v2665_v59 = vld [vmem:[#allocation6 + $0x40] sm:$0xff]  ;;  %1887 = vmatpush.bf16.msra.mxu0 %v2657_v58 }
  0xa4   :  { %v2673_v60 = vld [vmem:[#allocation6 + $0x80] sm:$0xff]  ;;  %1900 = vmatpush.bf16.msra.mxu1 %v2665_v59 }
  0xa5   :  { %v406_v7 = vsel %vm405_vm3, %v388_v63, %v389_v0  ;;  %v2681_v0 = vld [vmem:[#allocation6 + $0xc0] sm:$0xff]  ;;  %1913 = vmatpush.bf16.msra.mxu2 %v2673_v60 }
  0xa6   :  { %1926 = vmatpush.bf16.msra.mxu3 %v2681_v0  ;;  %v2705_v59 = vld [vmem:[#allocation6 + $0x180] sm:$0xff] }
  0xa7   :  { %1932 = vmatpush.bf16.msrb.mxu0 %v2696_v34  ;;  %v2713_v60 = vld [vmem:[#allocation6 + $0x1c0] sm:$0xff] }
  0xa9   :  { %v245_v1 = vpop.f32.mrf.mxu2  ;;  %v258_v2 = vpop.f32.mrf.mxu3 }
  0xaa   :  { %v390_v8 = vrot.slane %v245_v1, 2  ;;  %v391_v9 = vrot.slane %v258_v2, 1  ;;  %v221_v10 = vpop.f32.mrf.mxu0  ;;  %v234_v11 = vpop.f32.mrf.mxu1  ;;  %v2704_v1 = vld [vmem:[#allocation6 + $0x178] sm:$0xff]  ;;  %1971 = vmatpush.bf16.msrb.mxu3 %v2720_v3 }
  0xab   :  { %v2712_v2 = vld [vmem:[#allocation6 + $0x1b8] sm:$0xff]  ;;  %1945 = vmatpush.bf16.msrb.mxu1 %v2704_v1  ;;  %1933 = vmatpush.bf16.msrb.mxu0 %v2695_v13 }
  0xac   :  { %v408_v15 = vsel %vm407_vm6, %v390_v8, %v391_v9  ;;  %1958 = vmatpush.bf16.msrb.mxu2 %v2712_v2 }
  0xad   :  { %v410_v17 = vsel %vm409_vm7, %v406_v7, %v408_v15  ;;  %v2711_v15 = vld [vmem:[#allocation6 + $0x1b0] sm:$0xff] }
  0xae   :  { %v411_v21 = vsel %vm109_vm0, %v404_v16, %v410_v17  ;;  %v2719_v16 = vld [vmem:[#allocation6 + $0x1f0] sm:$0xff] }
  0xaf   :  { %v421_v23 = vadd.f32 %v411_v21, %v366_v14  ;;  %v2703_v14 = vld [vmem:[#allocation6 + $0x170] sm:$0xff]  ;;  %1972 = vmatpush.bf16.msrb.mxu3 %v2719_v16 }
  0xb0   :  { %1946 = vmatpush.bf16.msrb.mxu1 %v2703_v14  ;;  %1959 = vmatpush.bf16.msrb.mxu2 %v2711_v15 }
  0xb1   :  { %423 = vst [vmem:[#allocation2] ss:$2 sm:$0xff] %v421_v23  ;;  %v247_v24 = vpop.f32.mrf.mxu2  ;;  %v260_v25 = vpop.f32.mrf.mxu3  ;;  %v2694_v23 = vld [vmem:[#allocation6 + $0x128] sm:$0xff] }
  0xb2   :  { %v3013_v29 = vpop.f32.mrf.mxu0  ;;  %v3015_v30 = vpop.f32.mrf.mxu1  ;;  %v2702_v24 = vld [vmem:[#allocation6 + $0x168] sm:$0xff]  ;;  %1934 = vmatpush.bf16.msrb.mxu0 %v2694_v23 }
  0xb3   :  { %v392_v4 = vrot.slane %v3015_v30, 7  ;;  %v2710_v25 = vld [vmem:[#allocation6 + $0x1a8] sm:$0xff]  ;;  %v2693_v30 = vld [vmem:[#allocation6 + $0x120] sm:$0xff]  ;;  %1973 = vmatpush.bf16.msrb.mxu3 %v2718_v27 }
  0xb4   :  { %1947 = vmatpush.bf16.msrb.mxu1 %v2702_v24  ;;  %1960 = vmatpush.bf16.msrb.mxu2 %v2710_v25 }
  0xb5   :  { %v412_v17 = vsel %vm399_vm4, %v3013_v29, %v392_v4 }
  0xb6   :  { %1935 = vmatpush.bf16.msrb.mxu0 %v2693_v30  ;;  %v2728_v30 = vld [vmem:[#allocation6 + $0x238] sm:$0xff] }
  0xb7   :  { %1974 = vmatpush.bf16.msrb.mxu3 %v2717_v36 }
  0xb8   :  { %1948 = vmatpush.bf16.msrb.mxu1 %v2701_v31  ;;  %1961 = vmatpush.bf16.msrb.mxu2 %v2709_v35  ;;  %v2736_v31 = vld [vmem:[#allocation6 + $0x278] sm:$0xff] }
  0xb9   :  { %v297_v37 = vpop.f32.mrf.mxu2  ;;  %v310_v38 = vpop.f32.mrf.mxu3 }
  0xba   :  { %v273_v42 = vpop.f32.mrf.mxu0  ;;  %v286_v43 = vpop.f32.mrf.mxu1  ;;  %v393_v57 = vrot.slane %v297_v37, 6  ;;  %v394_v61 = vrot.slane %v310_v38, 5  ;;  %v2692_v37 = vld [vmem:[#allocation6 + $0x118] sm:$0xff] }
  0xbb   :  { %v2700_v38 = vld [vmem:[#allocation6 + $0x158] sm:$0xff]  ;;  %1936 = vmatpush.bf16.msrb.mxu0 %v2692_v37  ;;  %1975 = vmatpush.bf16.msrb.mxu3 %v2716_v40 }
  0xbc   :  { %v413_v7 = vsel %vm401_vm2, %v393_v57, %v394_v61  ;;  %1949 = vmatpush.bf16.msrb.mxu1 %v2700_v38  ;;  %1962 = vmatpush.bf16.msrb.mxu2 %v2708_v39 }
  0xbd   :  { %v414_v20 = vsel %vm403_vm5, %v412_v17, %v413_v7 }
  0xbf   :  { %1937 = vmatpush.bf16.msrb.mxu0 %v2691_v45  ;;  %1976 = vmatpush.bf16.msrb.mxu3 %v2715_v48 }
  0xc0   :  { %1950 = vmatpush.bf16.msrb.mxu1 %v2699_v46  ;;  %1963 = vmatpush.bf16.msrb.mxu2 %v2707_v47 }
  0xc1   :  { %v299_v49 = vpop.f32.mrf.mxu2  ;;  %v312_v50 = vpop.f32.mrf.mxu3 }
  0xc2   :  { %v323_v54 = vpop.f32.mrf.mxu0  ;;  %v336_v55 = vpop.f32.mrf.mxu1  ;;  %v2690_v49 = vld [vmem:[#allocation6 + $0x108] sm:$0xff] }
  0xc3   :  { %v395_v62 = vrot.slane %v323_v54, 4  ;;  %v396_v63 = vrot.slane %v336_v55, 3  ;;  %v2698_v50 = vld [vmem:[#allocation6 + $0x148] sm:$0xff]  ;;  %1938 = vmatpush.bf16.msrb.mxu0 %v2690_v49  ;;  %v2689_v55 = vld [vmem:[#allocation6 + $0x100] sm:$0xff]  ;;  %1977 = vmatpush.bf16.msrb.mxu3 %v2714_v52  ;;  %v2743_v52 = vld [vmem:[#allocation6 + $0x2b0] sm:$0xff] }
  0xc4   :  { %1951 = vmatpush.bf16.msrb.mxu1 %v2698_v50  ;;  %1964 = vmatpush.bf16.msrb.mxu2 %v2706_v51  ;;  %v2727_v50 = vld [vmem:[#allocation6 + $0x230] sm:$0xff] }
  0xc5   :  { %v415_v8 = vsel %vm405_vm3, %v395_v62, %v396_v63  ;;  %v2735_v51 = vld [vmem:[#allocation6 + $0x270] sm:$0xff] }
  0xc7   :  { %1939 = vmatpush.bf16.msrb.mxu0 %v2689_v55  ;;  %1978 = vmatpush.bf16.msrb.mxu3 %v2713_v60 }
  0xc8   :  { %1952 = vmatpush.bf16.msrb.mxu1 %v2697_v56  ;;  %1965 = vmatpush.bf16.msrb.mxu2 %v2705_v59 }
  0xc9   :  { %v349_v5 = vpop.f32.mrf.mxu2  ;;  %v362_v6 = vpop.f32.mrf.mxu3 }
  0xca   :  { %v397_v9 = vrot.slane %v349_v5, 2  ;;  %v398_v10 = vrot.slane %v362_v6, 1  ;;  %v325_v11 = vpop.f32.mrf.mxu0  ;;  %v338_v12 = vpop.f32.mrf.mxu1 }
  0xcc   :  { %v416_v19 = vsel %vm407_vm6, %v397_v9, %v398_v10  ;;  %v731_v10 = vld [vmem:[#allocation2 + $0x1] ss:$2 sm:$0xff] }
  0xcd   :  { %v417_v21 = vsel %vm409_vm7, %v415_v8, %v416_v19 }
  0xce   :  { %v418_v22 = vsel %vm109_vm0, %v414_v20, %v417_v21 }
  0xcf   :  { %v422_v26 = vadd.f32 %v418_v22, %v368_v18 }
  0xd1   :  { %424 = vst [vmem:[#allocation2 + $0x10] ss:$2 sm:$0xff] %v422_v26  ;;  %v351_v28 = vpop.f32.mrf.mxu2  ;;  %v364_v29 = vpop.f32.mrf.mxu3 }
  0xd2   :  { %v3026_v32 = vpop.f32.mrf.mxu0  ;;  %v3028_v33 = vpop.f32.mrf.mxu1 }
  0xd3   :  { %v750_v34 = vrot.slane %v3028_v33, 7 }
  0xd5   :  { %v764_v9 = vsel %vm399_vm4, %v3026_v32, %v750_v34  ;;  %v733_v34 = vld [vmem:[#allocation2 + $0x11] ss:$2 sm:$0xff] }
  0xd9   :  { %v557_v41 = vpop.f32.mrf.mxu2  ;;  %v570_v42 = vpop.f32.mrf.mxu3 }
  0xda   :  { %v533_v43 = vpop.f32.mrf.mxu0  ;;  %v546_v44 = vpop.f32.mrf.mxu1  ;;  %v751_v61 = vrot.slane %v557_v41, 6  ;;  %v752_v62 = vrot.slane %v570_v42, 5 }
  0xdb   :  { %v2744_v43 = vld [vmem:[#allocation6 + $0x2b8] sm:$0xff] }
  0xdc   :  { %v765_v3 = vsel %vm401_vm2, %v751_v61, %v752_v62  ;;  %v2752_v44 = vld [vmem:[#allocation6 + $0x2f8] sm:$0xff] }
  0xdd   :  { %v766_v12 = vsel %vm403_vm5, %v764_v9, %v765_v3  ;;  %v2750_v3 = vld [vmem:[#allocation6 + $0x2e8] sm:$0xff] }
  0xe1   :  { %v559_v53 = vpop.f32.mrf.mxu2  ;;  %v572_v54 = vpop.f32.mrf.mxu3 }
  0xe2   :  { %v583_v57 = vpop.f32.mrf.mxu0  ;;  %v596_v58 = vpop.f32.mrf.mxu1  ;;  %v2751_v53 = vld [vmem:[#allocation6 + $0x2f0] sm:$0xff] }
  0xe3   :  { %v753_v63 = vrot.slane %v583_v57, 4  ;;  %v754_v0 = vrot.slane %v596_v58, 3 }
  0xe5   :  { %v767_v4 = vsel %vm405_vm3, %v753_v63, %v754_v0  ;;  %v2726_v63 = vld [vmem:[#allocation6 + $0x228] sm:$0xff] }
  0xe6   :  { %v2734_v0 = vld [vmem:[#allocation6 + $0x268] sm:$0xff] }
  0xe9   :  { %v609_v1 = vpop.f32.mrf.mxu2  ;;  %v622_v2 = vpop.f32.mrf.mxu3 }
  0xea   :  { %v755_v5 = vrot.slane %v609_v1, 2  ;;  %v756_v6 = vrot.slane %v622_v2, 1  ;;  %v585_v7 = vpop.f32.mrf.mxu0  ;;  %v598_v8 = vpop.f32.mrf.mxu1  ;;  %v2742_v2 = vld [vmem:[#allocation6 + $0x2a8] sm:$0xff] }
  0xeb   :  { %v2725_v7 = vld [vmem:[#allocation6 + $0x220] sm:$0xff] }
  0xec   :  { %v768_v11 = vsel %vm407_vm6, %v755_v5, %v756_v6  ;;  %v2733_v8 = vld [vmem:[#allocation6 + $0x260] sm:$0xff] }
  0xed   :  { %v769_v13 = vsel %vm409_vm7, %v767_v4, %v768_v11  ;;  %v2749_v11 = vld [vmem:[#allocation6 + $0x2e0] sm:$0xff] }
  0xee   :  { %v770_v14 = vsel %vm109_vm0, %v766_v12, %v769_v13 }
  0xef   :  { %v780_v15 = vadd.f32 %v770_v14, %v731_v10  ;;  %v2741_v10 = vld [vmem:[#allocation6 + $0x2a0] sm:$0xff] }
  0xf1   :  { %782 = vst [vmem:[#allocation2 + $0x1] ss:$2 sm:$0xff] %v780_v15  ;;  %v611_v16 = vpop.f32.mrf.mxu2  ;;  %v624_v17 = vpop.f32.mrf.mxu3 }
  0xf2   :  { %v635_v18 = vpop.f32.mrf.mxu0  ;;  %v648_v19 = vpop.f32.mrf.mxu1 }
  0xf3   :  { %v757_v45 = vrot.slane %v648_v19, 7 }
  0xf5   :  { %v771_v54 = vsel %vm399_vm4, %v635_v18, %v757_v45  ;;  %v2776_v45 = vld [vmem:[#allocation6 + $0x3b8] sm:$0xff] }
  0xf8   :  { %v787_v20 = vld [vmem:[#allocation2] sm:$0xff]  ;;  %v788_v21 = vld [vmem:[#allocation2 + $0x8] sm:$0xff] }
  0xf9   :  { %v661_v22 = vpop.f32.mrf.mxu2  ;;  %v674_v23 = vpop.f32.mrf.mxu3  ;;  %v791_v24 = vmul.f32 0.125, %v787_v20  ;;  %v792_v25 = vmul.f32 0.125, %v788_v21  ;;  %v2724_v20 = vld [vmem:[#allocation6 + $0x218] sm:$0xff] }
  0xfa   :  { %v637_v26 = vpop.f32.mrf.mxu0  ;;  %v650_v27 = vpop.f32.mrf.mxu1  ;;  %v758_v46 = vrot.slane %v661_v22, 6  ;;  %v759_v47 = vrot.slane %v674_v23, 5  ;;  %v2732_v21 = vld [vmem:[#allocation6 + $0x258] sm:$0xff] }
  0xfb   :  { %799 = vst [vmem:[#allocation1] ss:$4 sm:$0xff] %v791_v24  ;;  %v2740_v24 = vld [vmem:[#allocation6 + $0x298] sm:$0xff]  ;;  %v2723_v26 = vld [vmem:[#allocation6 + $0x210] sm:$0xff] }
  0xfc   :  { %801 = vst [vmem:[#allocation1 + $0x20] ss:$4 sm:$0xff] %v792_v25  ;;  %v772_v57 = vsel %vm401_vm2, %v758_v46, %v759_v47  ;;  %v2748_v25 = vld [vmem:[#allocation6 + $0x2d8] sm:$0xff]  ;;  %v2731_v27 = vld [vmem:[#allocation6 + $0x250] sm:$0xff] }
  0xfd   :  { %v773_v4 = vsel %vm403_vm5, %v771_v54, %v772_v57  ;;  %v2784_v46 = vld [vmem:[#allocation6 + $0x3f8] sm:$0xff]  ;;  %v2775_v57 = vld [vmem:[#allocation6 + $0x3b0] sm:$0xff] }
 0x101   :  { %v663_v28 = vpop.f32.mrf.mxu2  ;;  %v676_v29 = vpop.f32.mrf.mxu3 }
 0x102   :  { %v802_v32 = vld.sshfl [vmem:[#allocation1] sm:$0xff pattern:$0x73625140]  ;;  %v803_v33 = vld.sshfl [vmem:[#allocation1 + $0x8] sm:$0xff pattern:$0x73625140]  ;;  %v687_v35 = vpop.f32.mrf.mxu0  ;;  %v700_v36 = vpop.f32.mrf.mxu1 }
 0x103   :  { %v836_v37 = vpack.c.bf16 %v802_v32, %v802_v32  ;;  %v837_v38 = vpack.c.bf16 %v803_v33, %v803_v33  ;;  %v804_v39 = vld.sshfl [vmem:[#allocation1 + $0x10] sm:$0xff pattern:$0x73625140]  ;;  %v805_v40 = vld.sshfl [vmem:[#allocation1 + $0x18] sm:$0xff pattern:$0x73625140] }
 0x104   :  { %v838_v41 = vpack.c.bf16 %v804_v39, %v804_v39  ;;  %v839_v42 = vpack.c.bf16 %v805_v40, %v805_v40  ;;  %v760_v48 = vrot.slane %v687_v35, 4  ;;  %v761_v49 = vrot.slane %v700_v36, 3  ;;  %v806_v12 = vld.sshfl [vmem:[#allocation1 + $0x20] sm:$0xff pattern:$0x73625140]  ;;  %v2739_v28 = vld [vmem:[#allocation6 + $0x290] sm:$0xff] }
 0x105   :  { %1888 = vmatmul.bf16.vlgmr.msra.gmra.mxu0 %v836_v37  ;;  %1901 = vmatmul.bf16.vlgmr.msra.gmra.mxu1 %v837_v38  ;;  %v807_v13 = vld.sshfl [vmem:[#allocation1 + $0x28] sm:$0xff pattern:$0x73625140]  ;;  %v808_v14 = vld.sshfl [vmem:[#allocation1 + $0x30] sm:$0xff pattern:$0x73625140]  ;;  %v840_v18 = vpack.c.bf16 %v806_v12, %v806_v12 }
 0x106   :  { %1914 = vmatmul.bf16.vlgmr.msra.gmra.mxu2 %v838_v41  ;;  %1927 = vmatmul.bf16.vlgmr.msra.gmra.mxu3 %v839_v42  ;;  %v774_v58 = vsel %vm405_vm3, %v760_v48, %v761_v49  ;;  %v809_v17 = vld.sshfl [vmem:[#allocation1 + $0x38] sm:$0xff pattern:$0x73625140]  ;;  %v841_v19 = vpack.c.bf16 %v807_v13, %v807_v13  ;;  %v842_v22 = vpack.c.bf16 %v808_v14, %v808_v14  ;;  %v2722_v35 = vld [vmem:[#allocation6 + $0x208] sm:$0xff]  ;;  %v2721_v39 = vld [vmem:[#allocation6 + $0x200] sm:$0xff] }
 0x107   :  { %1984 = vmatpush.bf16.msra.mxu0 %v2728_v30  ;;  %1997 = vmatpush.bf16.msra.mxu1 %v2736_v31  ;;  %v843_v23 = vpack.c.bf16 %v809_v17, %v809_v17  ;;  %v2747_v31 = vld [vmem:[#allocation6 + $0x2d0] sm:$0xff]  ;;  %v2730_v36 = vld [vmem:[#allocation6 + $0x248] sm:$0xff]  ;;  %v2729_v40 = vld [vmem:[#allocation6 + $0x240] sm:$0xff] }
 0x108   :  { %2010 = vmatpush.bf16.msra.mxu2 %v2744_v43  ;;  %2023 = vmatpush.bf16.msra.mxu3 %v2752_v44  ;;  %v2738_v37 = vld [vmem:[#allocation6 + $0x288] sm:$0xff]  ;;  %v2737_v41 = vld [vmem:[#allocation6 + $0x280] sm:$0xff]  ;;  %v2760_v43 = vld [vmem:[#allocation6 + $0x338] sm:$0xff] }
 0x109   :  { %v713_v55 = vpop.f32.mrf.mxu2  ;;  %v726_v56 = vpop.f32.mrf.mxu3  ;;  %v2746_v38 = vld [vmem:[#allocation6 + $0x2c8] sm:$0xff]  ;;  %v2745_v42 = vld [vmem:[#allocation6 + $0x2c0] sm:$0xff]  ;;  %v2768_v44 = vld [vmem:[#allocation6 + $0x378] sm:$0xff] }
 0x10a   :  { %v762_v59 = vrot.slane %v713_v55, 2  ;;  %v763_v60 = vrot.slane %v726_v56, 1  ;;  %v689_v61 = vpop.f32.mrf.mxu0  ;;  %v702_v62 = vpop.f32.mrf.mxu1  ;;  %v2759_v55 = vld [vmem:[#allocation6 + $0x330] sm:$0xff]  ;;  %v2770_v12 = vld [vmem:[#allocation6 + $0x388] sm:$0xff]  ;;  %v2753_v14 = vld [vmem:[#allocation6 + $0x300] sm:$0xff] }
 0x10b   :  { %1985 = vmatpush.bf16.msra.mxu0 %v2727_v50  ;;  %1998 = vmatpush.bf16.msra.mxu1 %v2735_v51  ;;  %v2767_v56 = vld [vmem:[#allocation6 + $0x370] sm:$0xff]  ;;  %v2774_v61 = vld [vmem:[#allocation6 + $0x3a8] sm:$0xff]  ;;  %v2777_v17 = vld [vmem:[#allocation6 + $0x3c0] sm:$0xff] }
 0x10c   :  { %v775_v1 = vsel %vm407_vm6, %v762_v59, %v763_v60  ;;  %2011 = vmatpush.bf16.msra.mxu2 %v2743_v52  ;;  %2024 = vmatpush.bf16.msra.mxu3 %v2751_v53  ;;  %v2758_v59 = vld [vmem:[#allocation6 + $0x328] sm:$0xff] }
 0x10d   :  { %v776_v5 = vsel %vm409_vm7, %v774_v58, %v775_v1  ;;  %v2783_v58 = vld [vmem:[#allocation6 + $0x3f0] sm:$0xff]  ;;  %v2766_v60 = vld [vmem:[#allocation6 + $0x368] sm:$0xff]  ;;  %v2781_v1 = vld [vmem:[#allocation6 + $0x3e0] sm:$0xff] }
 0x10e   :  { %v777_v6 = vsel %vm109_vm0, %v773_v4, %v776_v5  ;;  %v2782_v62 = vld [vmem:[#allocation6 + $0x3e8] sm:$0xff]  ;;  %v2772_v4 = vld [vmem:[#allocation6 + $0x398] sm:$0xff] }
 0x10f   :  { %v781_v9 = vadd.f32 %v777_v6, %v733_v34  ;;  %1986 = vmatpush.bf16.msra.mxu0 %v2726_v63  ;;  %1999 = vmatpush.bf16.msra.mxu1 %v2734_v0  ;;  %v2757_v63 = vld [vmem:[#allocation6 + $0x320] sm:$0xff]  ;;  %v2780_v5 = vld [vmem:[#allocation6 + $0x3d8] sm:$0xff]  ;;  %v2755_v6 = vld [vmem:[#allocation6 + $0x310] sm:$0xff] }
 0x110   :  { %2012 = vmatpush.bf16.msra.mxu2 %v2742_v2  ;;  %2025 = vmatpush.bf16.msra.mxu3 %v2750_v3  ;;  %v2765_v0 = vld [vmem:[#allocation6 + $0x360] sm:$0xff]  ;;  %v2756_v2 = vld [vmem:[#allocation6 + $0x318] sm:$0xff]  ;;  %v2778_v13 = vld [vmem:[#allocation6 + $0x3c8] sm:$0xff] }
 0x111   :  { %783 = vst [vmem:[#allocation2 + $0x11] ss:$2 sm:$0xff] %v781_v9  ;;  %v715_v15 = vpop.f32.mrf.mxu2  ;;  %v728_v16 = vpop.f32.mrf.mxu3  ;;  %v2773_v34 = vld [vmem:[#allocation6 + $0x3a0] sm:$0xff]  ;;  %v2764_v3 = vld [vmem:[#allocation6 + $0x358] sm:$0xff]  ;;  %v2779_v9 = vld [vmem:[#allocation6 + $0x3d0] sm:$0xff] }
 0x112   :  { %v2761_v15 = vld [vmem:[#allocation6 + $0x340] sm:$0xff] }
 0x113   :  { %1987 = vmatpush.bf16.msra.mxu0 %v2725_v7  ;;  %2000 = vmatpush.bf16.msra.mxu1 %v2733_v8  ;;  %v2763_v7 = vld [vmem:[#allocation6 + $0x350] sm:$0xff]  ;;  %v2769_v16 = vld [vmem:[#allocation6 + $0x380] sm:$0xff] }
 0x114   :  { %2013 = vmatpush.bf16.msra.mxu2 %v2741_v10  ;;  %2026 = vmatpush.bf16.msra.mxu3 %v2749_v11  ;;  %v2771_v8 = vld [vmem:[#allocation6 + $0x390] sm:$0xff]  ;;  %v2754_v10 = vld [vmem:[#allocation6 + $0x308] sm:$0xff] }
 0x115   :  { %1940 = vmatmul.bf16.vlgmr.msrb.gmra.mxu0 %v840_v18  ;;  %1953 = vmatmul.bf16.vlgmr.msrb.gmra.mxu1 %v841_v19  ;;  %v2762_v11 = vld [vmem:[#allocation6 + $0x348] sm:$0xff] }
 0x116   :  { %1966 = vmatmul.bf16.vlgmr.msrb.gmra.mxu2 %v842_v22  ;;  %1979 = vmatmul.bf16.vlgmr.msrb.gmra.mxu3 %v843_v23 }
 0x117   :  { %1988 = vmatpush.bf16.msra.mxu0 %v2724_v20  ;;  %2001 = vmatpush.bf16.msra.mxu1 %v2732_v21 }
 0x118   :  { %v789_v29 = vld [vmem:[#allocation2 + $0x10] sm:$0xff]  ;;  %v790_v30 = vld [vmem:[#allocation2 + $0x18] sm:$0xff]  ;;  %2014 = vmatpush.bf16.msra.mxu2 %v2740_v24  ;;  %2027 = vmatpush.bf16.msra.mxu3 %v2748_v25 }
 0x119   :  { %v793_v32 = vmul.f32 0.125, %v789_v29  ;;  %v794_v33 = vmul.f32 0.125, %v790_v30 }
 0x11b   :  { %810 = vst [vmem:[#allocation1] ss:$4 sm:$0xff] %v793_v32  ;;  %1989 = vmatpush.bf16.msra.mxu0 %v2723_v26  ;;  %2002 = vmatpush.bf16.msra.mxu1 %v2731_v27 }
 0x11c   :  { %811 = vst [vmem:[#allocation1 + $0x20] ss:$4 sm:$0xff] %v794_v33  ;;  %2015 = vmatpush.bf16.msra.mxu2 %v2739_v28  ;;  %2028 = vmatpush.bf16.msra.mxu3 %v2747_v31 }
 0x11f   :  { %1990 = vmatpush.bf16.msra.mxu0 %v2722_v35  ;;  %2003 = vmatpush.bf16.msra.mxu1 %v2730_v36 }
 0x120   :  { %2016 = vmatpush.bf16.msra.mxu2 %v2738_v37  ;;  %2029 = vmatpush.bf16.msra.mxu3 %v2746_v38 }
 0x122   :  { %v812_v47 = vld.sshfl [vmem:[#allocation1] sm:$0xff pattern:$0x73625140]  ;;  %v813_v48 = vld.sshfl [vmem:[#allocation1 + $0x8] sm:$0xff pattern:$0x73625140] }
 0x123   :  { %1991 = vmatpush.bf16.msra.mxu0 %v2721_v39  ;;  %2004 = vmatpush.bf16.msra.mxu1 %v2729_v40  ;;  %v844_v49 = vpack.c.bf16 %v812_v47, %v812_v47  ;;  %v845_v50 = vpack.c.bf16 %v813_v48, %v813_v48  ;;  %v814_v51 = vld.sshfl [vmem:[#allocation1 + $0x10] sm:$0xff pattern:$0x73625140]  ;;  %v815_v52 = vld.sshfl [vmem:[#allocation1 + $0x18] sm:$0xff pattern:$0x73625140] }
 0x124   :  { %2017 = vmatpush.bf16.msra.mxu2 %v2737_v41  ;;  %2030 = vmatpush.bf16.msra.mxu3 %v2745_v42  ;;  %v846_v53 = vpack.c.bf16 %v814_v51, %v814_v51  ;;  %v847_v54 = vpack.c.bf16 %v815_v52, %v815_v52  ;;  %v816_v18 = vld.sshfl [vmem:[#allocation1 + $0x20] sm:$0xff pattern:$0x73625140]  ;;  %v817_v19 = vld.sshfl [vmem:[#allocation1 + $0x28] sm:$0xff pattern:$0x73625140] }
 0x125   :  { %v818_v20 = vld.sshfl [vmem:[#allocation1 + $0x30] sm:$0xff pattern:$0x73625140]  ;;  %v819_v21 = vld.sshfl [vmem:[#allocation1 + $0x38] sm:$0xff pattern:$0x73625140]  ;;  %v848_v22 = vpack.c.bf16 %v816_v18, %v816_v18  ;;  %v849_v23 = vpack.c.bf16 %v817_v19, %v817_v19 }
 0x126   :  { %1992 = vmatmul.bf16.vlgmr.msra.gmra.mxu0 %v844_v49  ;;  %2005 = vmatmul.bf16.vlgmr.msra.gmra.mxu1 %v845_v50  ;;  %v850_v24 = vpack.c.bf16 %v818_v20, %v818_v20  ;;  %v851_v25 = vpack.c.bf16 %v819_v21, %v819_v21  ;;  %v2795_v41 = vld [vmem:[%s3054_s2] ss:$0 sm:$0xff]  ;;  %s2881_s2 = smov [#allocation8]  }
 0x127   :  { %2036 = vmatpush.bf16.msrb.mxu0 %v2760_v43  ;;  %2049 = vmatpush.bf16.msrb.mxu1 %v2768_v44  ;;  %s2097_s25 = sshll.u32 %s2881_s2, 4  ;;  %s2098_s25 = int_to_ptr.vmem [resolvable:$true] %s2097_s25 }
 0x128   :  { %2062 = vmatpush.bf16.msrb.mxu2 %v2776_v45  ;;  %2075 = vmatpush.bf16.msrb.mxu3 %v2784_v46 }
 0x129   :  { %2018 = vmatmul.bf16.vlgmr.msra.gmra.mxu2 %v846_v53  ;;  %2031 = vmatmul.bf16.vlgmr.msra.gmra.mxu3 %v847_v54 }
 0x12b   :  { %2037 = vmatpush.bf16.msrb.mxu0 %v2759_v55  ;;  %2050 = vmatpush.bf16.msrb.mxu1 %v2767_v56 }
 0x12c   :  { %2063 = vmatpush.bf16.msrb.mxu2 %v2775_v57  ;;  %2076 = vmatpush.bf16.msrb.mxu3 %v2783_v58 }
 0x12f   :  { %2038 = vmatpush.bf16.msrb.mxu0 %v2758_v59  ;;  %2051 = vmatpush.bf16.msrb.mxu1 %v2766_v60 }
 0x130   :  { %2064 = vmatpush.bf16.msrb.mxu2 %v2774_v61  ;;  %2077 = vmatpush.bf16.msrb.mxu3 %v2782_v62 }
 0x133   :  { %2039 = vmatpush.bf16.msrb.mxu0 %v2757_v63  ;;  %2052 = vmatpush.bf16.msrb.mxu1 %v2765_v0 }
 0x134   :  { %2065 = vmatpush.bf16.msrb.mxu2 %v2773_v34  ;;  %2078 = vmatpush.bf16.msrb.mxu3 %v2781_v1 }
 0x137   :  { %2040 = vmatpush.bf16.msrb.mxu0 %v2756_v2  ;;  %2053 = vmatpush.bf16.msrb.mxu1 %v2764_v3 }
 0x138   :  { %2066 = vmatpush.bf16.msrb.mxu2 %v2772_v4  ;;  %2079 = vmatpush.bf16.msrb.mxu3 %v2780_v5 }
 0x13b   :  { %2041 = vmatpush.bf16.msrb.mxu0 %v2755_v6  ;;  %2054 = vmatpush.bf16.msrb.mxu1 %v2763_v7 }
 0x13c   :  { %2067 = vmatpush.bf16.msrb.mxu2 %v2771_v8  ;;  %2080 = vmatpush.bf16.msrb.mxu3 %v2779_v9 }
 0x13f   :  { %2042 = vmatpush.bf16.msrb.mxu0 %v2754_v10  ;;  %2055 = vmatpush.bf16.msrb.mxu1 %v2762_v11 }
 0x140   :  { %2068 = vmatpush.bf16.msrb.mxu2 %v2770_v12  ;;  %2081 = vmatpush.bf16.msrb.mxu3 %v2778_v13 }
 0x143   :  { %2043 = vmatpush.bf16.msrb.mxu0 %v2753_v14  ;;  %2056 = vmatpush.bf16.msrb.mxu1 %v2761_v15 }
 0x144   :  { %2069 = vmatpush.bf16.msrb.mxu2 %v2769_v16  ;;  %2082 = vmatpush.bf16.msrb.mxu3 %v2777_v17 }
 0x146   :  { %2044 = vmatmul.bf16.vlgmr.msrb.gmra.mxu0 %v848_v22  ;;  %2057 = vmatmul.bf16.vlgmr.msrb.gmra.mxu1 %v849_v23 }
 0x147   :  { %2070 = vmatmul.bf16.vlgmr.msrb.gmra.mxu2 %v850_v24  ;;  %2083 = vmatmul.bf16.vlgmr.msrb.gmra.mxu3 %v851_v25 }
 0x182   :  { %v1889_v26 = vpop.f32.mrf.mxu0  ;;  %v1902_v27 = vpop.f32.mrf.mxu1 }
 0x183   :  { %v1890_v42 = vadd.f32 %v2795_v41, %v1889_v26 }
 0x185   :  { %v1903_v45 = vadd.f32 %v1902_v27, %v1890_v42 }
 0x189   :  { %v1915_v28 = vpop.f32.mrf.mxu2  ;;  %v1928_v29 = vpop.f32.mrf.mxu3 }
 0x18a   :  { %v1891_v30 = vpop.f32.mrf.mxu0  ;;  %v1904_v31 = vpop.f32.mrf.mxu1  ;;  %v1916_v48 = vadd.f32 %v1915_v28, %v1903_v45 }
 0x18c   :  { %v1929_v49 = vadd.f32 %v1928_v29, %v1916_v48 }
 0x191   :  { %v1917_v32 = vpop.f32.mrf.mxu2  ;;  %v1930_v33 = vpop.f32.mrf.mxu3 }
 0x192   :  { %v1941_v35 = vpop.f32.mrf.mxu0  ;;  %v1954_v36 = vpop.f32.mrf.mxu1 }
 0x193   :  { %v1942_v50 = vadd.f32 %v1941_v35, %v1929_v49 }
 0x195   :  { %v1955_v55 = vadd.f32 %v1954_v36, %v1942_v50 }
 0x199   :  { %v1967_v37 = vpop.f32.mrf.mxu2  ;;  %v1980_v38 = vpop.f32.mrf.mxu3 }
 0x19a   :  { %v1943_v39 = vpop.f32.mrf.mxu0  ;;  %v1956_v40 = vpop.f32.mrf.mxu1  ;;  %v1968_v56 = vadd.f32 %v1967_v37, %v1955_v55 }
 0x19c   :  { %v1981_v59 = vadd.f32 %v1980_v38, %v1968_v56 }
 0x1a1   :  { %v1969_v43 = vpop.f32.mrf.mxu2  ;;  %v1982_v44 = vpop.f32.mrf.mxu3 }
 0x1a3   :  { %v1993_v46 = vpop.f32.mrf.mxu0  ;;  %v2006_v47 = vpop.f32.mrf.mxu1 }
 0x1a4   :  { %v1994_v60 = vadd.f32 %v1993_v46, %v1981_v59 }
 0x1a6   :  { %v2007_v61 = vadd.f32 %v2006_v47, %v1994_v60 }
 0x1ab   :  { %v1995_v53 = vpop.f32.mrf.mxu0  ;;  %v2008_v54 = vpop.f32.mrf.mxu1 }
 0x1ac   :  { %v2019_v51 = vpop.f32.mrf.mxu2  ;;  %v2032_v52 = vpop.f32.mrf.mxu3 }
 0x1ad   :  { %v2020_v62 = vadd.f32 %v2019_v51, %v2007_v61 }
 0x1af   :  { %v2033_v63 = vadd.f32 %v2032_v52, %v2020_v62 }
 0x1b4   :  { %v2021_v57 = vpop.f32.mrf.mxu2  ;;  %v2034_v58 = vpop.f32.mrf.mxu3 }
 0x1c3   :  { %v2045_v0 = vpop.f32.mrf.mxu0  ;;  %v2058_v34 = vpop.f32.mrf.mxu1 }
 0x1c4   :  { %v2046_v1 = vadd.f32 %v2045_v0, %v2033_v63 }
 0x1c6   :  { %v2059_v2 = vadd.f32 %v2058_v34, %v2046_v1 }
 0x1ca   :  { %v2071_v3 = vpop.f32.mrf.mxu2  ;;  %v2084_v4 = vpop.f32.mrf.mxu3 }
 0x1cb   :  { %v2072_v5 = vadd.f32 %v2071_v3, %v2059_v2  ;;  %v2047_v6 = vpop.f32.mrf.mxu0  ;;  %v2060_v7 = vpop.f32.mrf.mxu1 }
 0x1cd   :  { %v2085_v8 = vadd.f32 %v2084_v4, %v2072_v5 }
 0x1cf   :  { %v2089_v9 = vrot.slane %v2085_v8, 1  ;;  %2091 = vst [vmem:[#allocation8] sm:$0x1] %v2085_v8 }
 0x1d1   :  { %2092 = vst [vmem:[#allocation8 + $0x1] sm:$0x1] %v2089_v9 }
 0x1d2   :  { %v2073_v10 = vpop.f32.mrf.mxu2  ;;  %v2086_v11 = vpop.f32.mrf.mxu3  ;;  %2105 = dma.vmem_to_hbm [thread:$0]  %s2098_s25, 32, %s2100_s28, [#allocation5], %s2882_s29, %s2882_s29, %s2883_s30  }
 0x1d3   :  { %2872 = dma.done.wait [#allocation5], 32  }
 0x1d4   :  { %2873 = vsyncadd [#allocation5], 4294967264 }
 0x1d5   :  { %2110 = vsyncpa [#allocation4], 1 }
 0x1d6   :  { %2111 = vsyncpa [#allocation7], 1 }
 0x1d7   :  { %2112 = vsyncpa [#allocation5], 1 }

</bundles_post_ra>
